<compile_context>
chip_gen: v7x
topology: tpu7x:2x2x1
jax: 0.10.0
libtpu: 0.0.40
codegen_flags: <defaults>
</compile_context>

<pallas_src>
import functools

import jax
import jax.numpy as jnp
from jax.experimental import pallas as pl
from jax.experimental.pallas import tpu as pltpu


def _cse_kernel(x_ref, p_ref, o_ref, *, inv_hw):
    """Fused cSE step: pool -> linear1+ReLU -> linear2+sigmoid -> rescale.

    x_ref : (BB, C, HWP)  input block (C on sublanes, padded HW on lanes)
    p_ref : (4, C, MID)   packed params: [W1^T, W2^T, b2 (bcast), b1 (bcast)]
    o_ref : (BB, C, HWP)
    """
    x = x_ref[...]
    p = p_ref[...]                       # (4, C, MID), float32
    w1 = p[0:1]                          # (1, C, MID)
    w2t = p[1:2]                         # (1, C, MID)
    b2 = p[2:3, :, 0:1]                  # (1, C, 1)
    b1 = p[3:4, 0:1, :]                  # (1, 1, MID)

    # Squeeze: global average pool over the (zero-padded) spatial axis. Lane
    # reduce keeps C on sublanes (no relayout); accumulate in f32 (v5e has no
    # bf16 VPU path) and multiply by the precomputed 1/(H*W); the pad is zero
    # so the sum is exact.
    pooled = jnp.sum(x.astype(jnp.float32), axis=-1, keepdims=True) * inv_hw  # (BB, C, 1)

    # Excitation on the VPU/XLU: the C->MID->C contractions are ~100x smaller
    # than one MXU tile, so broadcast-multiply + reduce beats MXU push/pop
    # latency and keeps the gate on sublanes for the rescale.
    z = jnp.sum(pooled * w1, axis=1, keepdims=True) + b1       # (BB, 1, MID)
    z = jnp.maximum(z, 0.0)
    s = jnp.sum(z * w2t, axis=-1, keepdims=True) + b2          # (BB, C, 1)
    s = jax.nn.sigmoid(s)

    # Scale: per-channel gate broadcast across all spatial positions (pure VPU).
    o_ref[...] = (x * s.astype(x.dtype)).astype(o_ref.dtype)


def _tpu_hw_info():
    """Return (tensorcores_per_chip, vmem_capacity_bytes), conservative fallbacks."""
    vmem_cap = 128 * 1024 * 1024
    num_cores = 1
    try:
        info = pltpu.get_tpu_info()
        vmem_cap = int(getattr(info, "vmem_capacity_bytes", vmem_cap))
        for attr in ("num_cores", "tensorcores_per_chip", "cores_per_chip",
                     "num_tensorcores"):
            val = getattr(info, attr, None)
            if val:
                num_cores = int(val)
                break
        else:
            # v7x is the generation with 2 TCs/chip and 64 MiB VMEM per TC.
            if vmem_cap <= 64 * 1024 * 1024:
                num_cores = 2
    except Exception:
        pass  # probing hardware info must never break the kernel
    return num_cores, vmem_cap


def _bspec(block_shape, index_map, single_buffer):
    """BlockSpec, optionally requesting single buffering (with fallback)."""
    if single_buffer:
        try:
            return pl.BlockSpec(block_shape, index_map,
                                pipeline_mode=pl.Buffered(1))
        except Exception:
            pass
    return pl.BlockSpec(block_shape, index_map)


def _build_cse_call(*, B, C, HWP, MID, dtype, batch_block, vmem_limit, inv_hw,
                    single_buffer):
    num_blocks = B // batch_block
    itemsize = jnp.dtype(dtype).itemsize
    # With one grid step there is nothing to overlap -> single-buffer x/out too.
    single_io = single_buffer and num_blocks == 1
    kernel = functools.partial(_cse_kernel, inv_hw=inv_hw)
    cost = pl.CostEstimate(
        flops=3 * B * C * HWP + 4 * B * C * MID,
        transcendentals=B * C,
        bytes_accessed=2 * B * C * HWP * itemsize + 4 * C * MID * 4,
    )
    return pl.pallas_call(
        kernel,
        out_shape=jax.ShapeDtypeStruct((B, C, HWP), dtype),
        grid_spec=pltpu.PrefetchScalarGridSpec(
            num_scalar_prefetch=0,
            grid=(num_blocks,),
            in_specs=[
                _bspec((batch_block, C, HWP), lambda i: (i, 0, 0), single_io),
                _bspec((4, C, MID), lambda i: (0, 0, 0), single_buffer),
            ],
            out_specs=_bspec((batch_block, C, HWP), lambda i: (i, 0, 0),
                             single_io),
        ),
        input_output_aliases={0: 0},
        compiler_params=pltpu.CompilerParams(
            dimension_semantics=("parallel",),
            vmem_limit_bytes=vmem_limit),
        cost_estimate=cost,
    )


def cse_forward(x, w1, b1, w2, b2, *, batch_block=None):
    """cSE forward.

    x : (B, C, H, W)
    w1: (C, MID)  (= linear1.weight.T),  b1: (MID,)
    w2: (MID, C)  (= linear2.weight.T),  b2: (C,)
    """
    B, C, H, W = x.shape
    HW = H * W
    MID = w1.shape[1]
    itemsize = jnp.dtype(x.dtype).itemsize

    # Lane-density guard: keep the flattened spatial axis a multiple of 128 so
    # the rescale issues unmasked lane-dense stores. Zero pad; inv_hw stays
    # 1/(H*W) so the global average pool is unbiased.
    HWP = 128 * pl.cdiv(HW, 128)
    x_flat = x.reshape(B, C, HW)
    if HWP != HW:
        x_flat = jnp.pad(x_flat, ((0, 0), (0, 0), (0, HWP - HW)))

    num_cores, vmem_cap = _tpu_hw_info()
    # Explicit VMEM budget (re-derived per chip: v7x has 64 MiB vs 128 MiB).
    vmem_limit = int(min(max(32 << 20, 4 * B * C * HWP * itemsize + (8 << 20)),
                         vmem_cap * 3 // 4))

    if batch_block is None:
        # Feed every TensorCore (v7x: 2/chip); on 1-TC parts collapse the grid
        # to a single step to avoid per-step overhead.
        want = B // num_cores if (num_cores > 1 and B % num_cores == 0) else B
        # Cap so in+out double-buffered blocks stay inside the VMEM budget.
        cap = max(1, (vmem_limit // 2) // (4 * C * HWP * itemsize))
        want = max(1, min(want, cap))
        while B % want != 0:
            want -= 1
        batch_block = want
    assert B % batch_block == 0, "batch_block must divide B"
    # TODO(synk): once batch_block*C*HW*itemsize outgrows the VMEM budget (hit
    # much sooner on v7x's 64 MiB), switch to a two-pass grid over (batch,
    # HW-chunks): pass 1 accumulates the pool, pass 2 applies the gate,
    # instead of shrinking batch_block further.

    # Pack all four tiny parameter tensors into a single VMEM input (one DMA
    # descriptor instead of four lane-padded ones).
    packed = jnp.stack(
        [w1,
         w2.T,
         jnp.broadcast_to(b2[:, None], (C, MID)),
         jnp.broadcast_to(b1[None, :], (C, MID))],
        axis=0).astype(jnp.float32)                     # (4, C, MID)

    build = functools.partial(
        _build_cse_call, B=B, C=C, HWP=HWP, MID=MID, dtype=x.dtype,
        batch_block=batch_block, vmem_limit=vmem_limit, inv_hw=1.0 / HW)

    try:
        out_flat = build(single_buffer=True)(x_flat, packed)
    except Exception:
        # Fallback if this jax build rejects pl.Buffered(1) single-buffering.
        out_flat = build(single_buffer=False)(x_flat, packed)

    if HWP != HW:
        out_flat = out_flat[:, :, :HW]
    return out_flat.reshape(B, C, H, W)


def _cse_ref(x, w1, b1, w2, b2):
    """Pure-JAX reference matching the PyTorch forward exactly."""
    B, C, H, W = x.shape
    pooled = x.reshape(B, C, H * W).mean(-1)          # (B, C)
    z = jnp.maximum(pooled @ w1 + b1, 0.0)            # (B, MID)
    s = jax.nn.sigmoid(z @ w2 + b2)                   # (B, C)
    return x * s[:, :, None, None]


if __name__ == "__main__":
    # Module config: in_channels=32, r=16 -> hidden = 32 // 16 = 2
    B, C, H, W = 2, 32, 16, 16
    R = 16
    MID = C // R

    key = jax.random.PRNGKey(0)
    kx, k1, k2, k3, k4 = jax.random.split(key, 5)

    x = jax.random.normal(kx, (B, C, H, W), dtype=jnp.float32)

    # Deterministic parameter init (PyTorch Linear-style uniform bounds).
    # nn.Linear(C, MID): weight (MID, C) -> stored transposed as (C, MID).
    bound1 = 1.0 / jnp.sqrt(C)
    w1 = jax.random.uniform(k1, (C, MID), jnp.float32, -bound1, bound1)
    b1 = jax.random.uniform(k2, (MID,), jnp.float32, -bound1, bound1)
    # nn.Linear(MID, C): weight (C, MID) -> stored transposed as (MID, C).
    bound2 = 1.0 / jnp.sqrt(MID)
    w2 = jax.random.uniform(k3, (MID, C), jnp.float32, -bound2, bound2)
    b2 = jax.random.uniform(k4, (C,), jnp.float32, -bound2, bound2)

    out = cse_forward(x, w1, b1, w2, b2)
    out = jax.block_until_ready(out)

    ref = _cse_ref(x, w1, b1, w2, b2)
    assert out.shape == (B, C, H, W)
    assert jnp.allclose(out, ref, atol=1e-5, rtol=1e-5), "mismatch vs reference"

    print("KERNEL_OK")
</pallas_src>

<mosaic_0001>
module attributes {stable_mosaic.version = 11 : i64} {
  func.func @_cse_kernel(%arg0: i32, %arg1: memref<2x32x256xf32, #tpu.memory_space<vmem>>, %arg2: memref<4x32x2xf32, #tpu.memory_space<vmem>>, %arg3: memref<2x32x256xf32, #tpu.memory_space<vmem>>) attributes {dimension_semantics = [#tpu.dimension_semantics<parallel>], iteration_bounds = array<i64: 1>, scalar_prefetch = 0 : i64, scratch_operands = 0 : i64, tpu.core_type = #tpu.core_type<tc>, window_params = [{pipeline_mode = #tpu.pipeline_mode<synchronous>, transform_indices = @transform_0, window_bounds = array<i64: 2, 32, 256>}, {pipeline_mode = #tpu.pipeline_mode<synchronous>, transform_indices = @transform_1, window_bounds = array<i64: 4, 32, 2>}, {pipeline_mode = #tpu.pipeline_mode<synchronous>, transform_indices = @transform_2, window_bounds = array<i64: 2, 32, 256>}]} {
    %c0 = arith.constant 0 : index
    %c0_0 = arith.constant 0 : index
    %c0_1 = arith.constant 0 : index
    %0 = vector.load %arg1[%c0, %c0_0, %c0_1] : memref<2x32x256xf32, #tpu.memory_space<vmem>>, vector<2x32x256xf32>
    %c0_2 = arith.constant 0 : index
    %c0_3 = arith.constant 0 : index
    %c0_4 = arith.constant 0 : index
    %1 = vector.load %arg2[%c0_2, %c0_3, %c0_4] : memref<4x32x2xf32, #tpu.memory_space<vmem>>, vector<4x32x2xf32>
    %2 = vector.extract_strided_slice %1 {offsets = [0, 0, 0], sizes = [1, 32, 2], strides = [1, 1, 1]} : vector<4x32x2xf32> to vector<1x32x2xf32>
    %3 = vector.extract_strided_slice %1 {offsets = [1, 0, 0], sizes = [1, 32, 2], strides = [1, 1, 1]} : vector<4x32x2xf32> to vector<1x32x2xf32>
    %4 = vector.extract_strided_slice %1 {offsets = [2, 0, 0], sizes = [1, 32, 1], strides = [1, 1, 1]} : vector<4x32x2xf32> to vector<1x32x1xf32>
    %5 = vector.extract_strided_slice %1 {offsets = [3, 0, 0], sizes = [1, 1, 2], strides = [1, 1, 1]} : vector<4x32x2xf32> to vector<1x1x2xf32>
    %cst = arith.constant dense<0.000000e+00> : vector<2x32xf32>
    %6 = vector.multi_reduction <add>, %0, %cst [2] : vector<2x32x256xf32> to vector<2x32xf32>
    %7 = vector.shape_cast %6 : vector<2x32xf32> to vector<2x32x1xf32>
    %cst_5 = arith.constant 3.906250e-03 : f32
    %8 = vector.broadcast %cst_5 : f32 to vector<2x32x1xf32>
    %9 = arith.mulf %7, %8 : vector<2x32x1xf32>
    %10 = vector.broadcast %9 : vector<2x32x1xf32> to vector<2x32x2xf32>
    %11 = vector.broadcast %2 : vector<1x32x2xf32> to vector<2x32x2xf32>
    %12 = arith.mulf %10, %11 : vector<2x32x2xf32>
    %cst_6 = arith.constant dense<0.000000e+00> : vector<2x2xf32>
    %13 = vector.multi_reduction <add>, %12, %cst_6 [1] : vector<2x32x2xf32> to vector<2x2xf32>
    %14 = vector.shape_cast %13 : vector<2x2xf32> to vector<2x1x2xf32>
    %15 = vector.broadcast %5 : vector<1x1x2xf32> to vector<2x1x2xf32>
    %16 = arith.addf %14, %15 : vector<2x1x2xf32>
    %cst_7 = arith.constant 0.000000e+00 : f32
    %17 = vector.broadcast %cst_7 : f32 to vector<2x1x2xf32>
    %18 = arith.maximumf %16, %17 : vector<2x1x2xf32>
    %19 = vector.broadcast %18 : vector<2x1x2xf32> to vector<2x32x2xf32>
    %20 = vector.broadcast %3 : vector<1x32x2xf32> to vector<2x32x2xf32>
    %21 = arith.mulf %19, %20 : vector<2x32x2xf32>
    %cst_8 = arith.constant dense<0.000000e+00> : vector<2x32xf32>
    %22 = vector.multi_reduction <add>, %21, %cst_8 [2] : vector<2x32x2xf32> to vector<2x32xf32>
    %23 = vector.shape_cast %22 : vector<2x32xf32> to vector<2x32x1xf32>
    %24 = vector.broadcast %4 : vector<1x32x1xf32> to vector<2x32x1xf32>
    %25 = arith.addf %23, %24 : vector<2x32x1xf32>
    %26 = arith.negf %25 : vector<2x32x1xf32>
    %27 = math.exp %26 : vector<2x32x1xf32>
    %cst_9 = arith.constant 1.000000e+00 : f32
    %28 = vector.broadcast %cst_9 : f32 to vector<2x32x1xf32>
    %29 = arith.addf %28, %27 : vector<2x32x1xf32>
    %30 = arith.divf %28, %29 : vector<2x32x1xf32>
    %31 = vector.broadcast %30 : vector<2x32x1xf32> to vector<2x32x256xf32>
    %32 = arith.mulf %0, %31 : vector<2x32x256xf32>
    %c0_10 = arith.constant 0 : index
    %c0_11 = arith.constant 0 : index
    %c0_12 = arith.constant 0 : index
    %33 = vector.load %arg3[%c0_10, %c0_11, %c0_12] : memref<2x32x256xf32, #tpu.memory_space<vmem>>, vector<2x32x256xf32>
    tpu.vector_store %arg3[%c0_10, %c0_11, %c0_12], %32 {strides = array<i32>} : memref<2x32x256xf32, #tpu.memory_space<vmem>>, vector<2x32x256xf32>,
    return
  }
  func.func @transform_0(%arg0: i32) -> (i32, i32, i32) {
    %c0_i32 = arith.constant 0 : i32
    %c0_i32_0 = arith.constant 0 : i32
    %c0_i32_1 = arith.constant 0 : i32
    return %arg0, %c0_i32, %c0_i32_0 : i32, i32, i32
  }
  func.func @transform_1(%arg0: i32) -> (i32, i32, i32) {
    %c0_i32 = arith.constant 0 : i32
    %c0_i32_0 = arith.constant 0 : i32
    %c0_i32_1 = arith.constant 0 : i32
    %c0_i32_2 = arith.constant 0 : i32
    return %c0_i32, %c0_i32_0, %c0_i32_1 : i32, i32, i32
  }
  func.func @transform_2(%arg0: i32) -> (i32, i32, i32) {
    %c0_i32 = arith.constant 0 : i32
    %c0_i32_0 = arith.constant 0 : i32
    %c0_i32_1 = arith.constant 0 : i32
    return %arg0, %c0_i32, %c0_i32_0 : i32, i32, i32
  }
}

module attributes {stable_mosaic.version = 11 : i64} {
  func.func @_cse_kernel(%arg0: i32, %arg1: memref<2x32x256xf32, #tpu.memory_space<vmem>>, %arg2: memref<4x32x2xf32, #tpu.memory_space<vmem>>, %arg3: memref<2x32x256xf32, #tpu.memory_space<vmem>>) attributes {dimension_semantics = [#tpu.dimension_semantics<parallel>], iteration_bounds = array<i64: 1>, scalar_prefetch = 0 : i64, scratch_operands = 0 : i64, tpu.core_type = #tpu.core_type<tc>, window_params = [{transform_indices = @transform_0, window_bounds = array<i64: 2, 32, 256>}, {pipeline_mode = #tpu.pipeline_mode<synchronous>, transform_indices = @transform_1, window_bounds = array<i64: 4, 32, 2>}, {transform_indices = @transform_2, window_bounds = array<i64: 2, 32, 256>}]} {
    %c0 = arith.constant 0 : index
    %c0_0 = arith.constant 0 : index
    %c0_1 = arith.constant 0 : index
    %0 = vector.load %arg1[%c0, %c0_0, %c0_1] : memref<2x32x256xf32, #tpu.memory_space<vmem>>, vector<2x32x256xf32>
    %c0_2 = arith.constant 0 : index
    %c0_3 = arith.constant 0 : index
    %c0_4 = arith.constant 0 : index
    %1 = vector.load %arg2[%c0_2, %c0_3, %c0_4] : memref<4x32x2xf32, #tpu.memory_space<vmem>>, vector<4x32x2xf32>
    %2 = vector.extract_strided_slice %1 {offsets = [0, 0, 0], sizes = [1, 32, 2], strides = [1, 1, 1]} : vector<4x32x2xf32> to vector<1x32x2xf32>
    %3 = vector.extract_strided_slice %1 {offsets = [1, 0, 0], sizes = [1, 32, 2], strides = [1, 1, 1]} : vector<4x32x2xf32> to vector<1x32x2xf32>
    %4 = vector.extract_strided_slice %1 {offsets = [2, 0, 0], sizes = [1, 32, 1], strides = [1, 1, 1]} : vector<4x32x2xf32> to vector<1x32x1xf32>
    %5 = vector.extract_strided_slice %1 {offsets = [3, 0, 0], sizes = [1, 1, 2], strides = [1, 1, 1]} : vector<4x32x2xf32> to vector<1x1x2xf32>
    %cst = arith.constant dense<0.000000e+00> : vector<2x32xf32>
    %6 = vector.multi_reduction <add>, %0, %cst [2] : vector<2x32x256xf32> to vector<2x32xf32>
    %7 = vector.shape_cast %6 : vector<2x32xf32> to vector<2x32x1xf32>
    %cst_5 = arith.constant 3.906250e-03 : f32
    %8 = vector.broadcast %cst_5 : f32 to vector<2x32x1xf32>
    %9 = arith.mulf %7, %8 : vector<2x32x1xf32>
    %10 = vector.broadcast %9 : vector<2x32x1xf32> to vector<2x32x2xf32>
    %11 = vector.broadcast %2 : vector<1x32x2xf32> to vector<2x32x2xf32>
    %12 = arith.mulf %10, %11 : vector<2x32x2xf32>
    %cst_6 = arith.constant dense<0.000000e+00> : vector<2x2xf32>
    %13 = vector.multi_reduction <add>, %12, %cst_6 [1] : vector<2x32x2xf32> to vector<2x2xf32>
    %14 = vector.shape_cast %13 : vector<2x2xf32> to vector<2x1x2xf32>
    %15 = vector.broadcast %5 : vector<1x1x2xf32> to vector<2x1x2xf32>
    %16 = arith.addf %14, %15 : vector<2x1x2xf32>
    %cst_7 = arith.constant 0.000000e+00 : f32
    %17 = vector.broadcast %cst_7 : f32 to vector<2x1x2xf32>
    %18 = arith.maximumf %16, %17 : vector<2x1x2xf32>
    %19 = vector.broadcast %18 : vector<2x1x2xf32> to vector<2x32x2xf32>
    %20 = vector.broadcast %3 : vector<1x32x2xf32> to vector<2x32x2xf32>
    %21 = arith.mulf %19, %20 : vector<2x32x2xf32>
    %cst_8 = arith.constant dense<0.000000e+00> : vector<2x32xf32>
    %22 = vector.multi_reduction <add>, %21, %cst_8 [2] : vector<2x32x2xf32> to vector<2x32xf32>
    %23 = vector.shape_cast %22 : vector<2x32xf32> to vector<2x32x1xf32>
    %24 = vector.broadcast %4 : vector<1x32x1xf32> to vector<2x32x1xf32>
    %25 = arith.addf %23, %24 : vector<2x32x1xf32>
    %26 = arith.negf %25 : vector<2x32x1xf32>
    %27 = math.exp %26 : vector<2x32x1xf32>
    %cst_9 = arith.constant 1.000000e+00 : f32
    %28 = vector.broadcast %cst_9 : f32 to vector<2x32x1xf32>
    %29 = arith.addf %28, %27 : vector<2x32x1xf32>
    %30 = arith.divf %28, %29 : vector<2x32x1xf32>
    %31 = vector.broadcast %30 : vector<2x32x1xf32> to vector<2x32x256xf32>
    %32 = arith.mulf %0, %31 : vector<2x32x256xf32>
    %c0_10 = arith.constant 0 : index
    %c0_11 = arith.constant 0 : index
    %c0_12 = arith.constant 0 : index
    %33 = vector.load %arg3[%c0_10, %c0_11, %c0_12] : memref<2x32x256xf32, #tpu.memory_space<vmem>>, vector<2x32x256xf32>
    tpu.vector_store %arg3[%c0_10, %c0_11, %c0_12], %32 {strides = array<i32>} : memref<2x32x256xf32, #tpu.memory_space<vmem>>, vector<2x32x256xf32>,
    return
  }
  func.func @transform_0(%arg0: i32) -> (i32, i32, i32) {
    %c0_i32 = arith.constant 0 : i32
    %c0_i32_0 = arith.constant 0 : i32
    %c0_i32_1 = arith.constant 0 : i32
    return %arg0, %c0_i32, %c0_i32_0 : i32, i32, i32
  }
  func.func @transform_1(%arg0: i32) -> (i32, i32, i32) {
    %c0_i32 = arith.constant 0 : i32
    %c0_i32_0 = arith.constant 0 : i32
    %c0_i32_1 = arith.constant 0 : i32
    %c0_i32_2 = arith.constant 0 : i32
    return %c0_i32, %c0_i32_0, %c0_i32_1 : i32, i32, i32
  }
  func.func @transform_2(%arg0: i32) -> (i32, i32, i32) {
    %c0_i32 = arith.constant 0 : i32
    %c0_i32_0 = arith.constant 0 : i32
    %c0_i32_1 = arith.constant 0 : i32
    return %arg0, %c0_i32, %c0_i32_0 : i32, i32, i32
  }
}

</mosaic_0001>

<bundles_post_ra>
// kernel: tpu_custom_call.1
= control target key start
LH: loop header
LB: loop body
LE: loop exit
PB: predicated region body
PF: predicated region fallthrough
CT: control target
= control target key end

     0   :  { %7 = vsyncpa [#allocation3], 0  ;;  %s575_s0 = inlined_call_operand.hbm [shape: f32[2,32,256], index: 0, kind: input, shape index: {}, may-alias: {0,2}]   ;;  %s576_s1 = inlined_call_operand.vmem [shape: f32[4,32,2], index: 1, kind: input, shape index: {}]   ;;  %s577_s2 = inlined_call_operand.hbm [shape: f32[2,32,256], index: 2, kind: output, shape index: {}, may-alias: {0,2}]  }
   0x1   :  { %8 = vsyncpa [#allocation4], 0  ;;  %s406_s9 = smov [#allocation2]   ;;  %s358_s13 = scalar_lea.hbm %s575_s0, 2048 }
   0x2   :  { %s14_s10 = sshll.u32 %s406_s9, 4  ;;  %p359_p0 = scmp.ne.s32.totalorder %s575_s0, %s358_s13  ;;  %s15_s10 = int_to_ptr.vmem [resolvable:$true] %s14_s10 }
   0x3   :  { %p362_p1 = scmp.lt.u32.totalorder %s358_s13, %s575_s0 }
   0x5   :  { %p364_p2 = pnand %p362_p1, %p359_p0 }
   0x7   :  { %367 = shalt.err (!%p364_p2)
}
   0x8   :  { %s368_s18 = scalar_lea.vmem %s15_s10, 2048  ;;  %p373_p4 = scmp.lt.s32.totalorder %s15_s10, %s15_s10 }
   0x9   :  { %p369_p3 = scmp.ne.s32.totalorder %s15_s10, %s368_s18  ;;  %p374_p5 = scmp.lt.s32.totalorder %s368_s18, %s368_s18 }
   0xb   :  { %p375_p6 = por %p374_p5, %p373_p4 }
   0xd   :  { %p376_p7 = pnand %p375_p6, %p369_p3 }
   0xf   :  { %379 = shalt.err (!%p376_p7)
}
  0x10   :  { %s407_s19 = smov 256   ;;  %s408_s20 = smov 16  }
  0x11   :  { %20 = dma.hbm_to_vmem [thread:$0]  %s575_s0, 2048, %s15_s10, [#allocation3], %s407_s19, %s407_s19, %s408_s20  }
  0x12   :  { %402 = dma.done.wait [#allocation3], 2048  }
  0x13   :  { %403 = vsyncadd [#allocation3], 4294965248  ;;  %v441_v0 = vld [vmem:[#allocation2 + $0x40] sm:$0xff]  ;;  %v443_v1 = vld [vmem:[#allocation2 + $0x48] sm:$0xff]  ;;  %vm95_vm0 = vcmask 15360  }
  0x14   :  { %v445_v2 = vld [vmem:[#allocation2] sm:$0xff]  ;;  %v67_v3 = vadd.f32 %v443_v1, %v441_v0  ;;  %v449_v4 = vld [vmem:[#allocation2 + $0x8] sm:$0xff]  ;;  %v451_v5 = vld [vmem:[#allocation2 + $0x50] sm:$0xff] }
  0x15   :  { %v453_v6 = vld [vmem:[#allocation2 + $0x58] sm:$0xff]  ;;  %v55_v7 = vadd.f32 %v449_v4, %v445_v2  ;;  %v457_v8 = vld [vmem:[#allocation2 + $0x10] sm:$0xff]  ;;  %v465_v12 = vld [vmem:[#allocation2 + $0x60] sm:$0xff] }
  0x16   :  { %v459_v9 = vld [vmem:[#allocation2 + $0x18] sm:$0xff]  ;;  %68 = vadd.xlane.f32.xlu1 %v67_v3  ;;  %v70_v10 = vadd.f32 %v453_v6, %v451_v5  ;;  %v467_v13 = vld [vmem:[#allocation2 + $0x68] sm:$0xff]  ;;  %v469_v14 = vld [vmem:[#allocation2 + $0x20] sm:$0xff] }
  0x17   :  { %56 = vadd.xlane.f32.xlu0 %v55_v7  ;;  %v58_v11 = vadd.f32 %v459_v9, %v457_v8  ;;  %v471_v15 = vld [vmem:[#allocation2 + $0x28] sm:$0xff]  ;;  %v73_v16 = vadd.f32 %v467_v13, %v465_v12  ;;  %v477_v18 = vld [vmem:[#allocation2 + $0x70] sm:$0xff]  ;;  %v479_v19 = vld [vmem:[#allocation2 + $0x78] sm:$0xff] }
  0x18   :  { %v61_v17 = vadd.f32 %v471_v15, %v469_v14  ;;  %v481_v20 = vld [vmem:[#allocation2 + $0x30] sm:$0xff]  ;;  %v483_v21 = vld [vmem:[#allocation2 + $0x38] sm:$0xff]  ;;  %v76_v22 = vadd.f32 %v479_v19, %v477_v18  ;;  %v42_v27 = vld [vmem:[%s576_s1] sm:$0xff] }
  0x19   :  { %v64_v23 = vadd.f32 %v483_v21, %v481_v20  ;;  %v43_v30 = vld [vmem:[%s576_s1 + $0x8] sm:$0xff]  ;;  %v44_v40 = vld [vmem:[%s576_s1 + $0x10] sm:$0xff]  ;;  %v45_v49 = vld [vmem:[%s576_s1 + $0x18] sm:$0xff] }
  0x1a   :  { %71 = vadd.xlane.f32.xlu1 %v70_v10 }
  0x1b   :  { %59 = vadd.xlane.f32.xlu0 %v58_v11 }
  0x1e   :  { %74 = vadd.xlane.f32.xlu1 %v73_v16 }
  0x1f   :  { %62 = vadd.xlane.f32.xlu0 %v61_v17 }
  0x22   :  { %77 = vadd.xlane.f32.xlu1 %v76_v22 }
  0x23   :  { %65 = vadd.xlane.f32.xlu0 %v64_v23 }
  0xa3   :  { %v69_v24 = vpop.xlane.xlu1 %68 }
  0xa4   :  { %v83_v25 = vmul.f32 0.00390625, %v69_v24  ;;  %v57_v26 = vpop.xlane.xlu0 %56  ;;  %v126_v24 = vlaneseq }
  0xa5   :  { %v79_v33 = vmul.f32 0.00390625, %v57_v26 }
  0xa6   :  { %v91_v28 = vmul.f32 %v83_v25, %v42_v27 }
  0xa7   :  { %v72_v29 = vpop.xlane.xlu1 %71  ;;  %v87_v43 = vmul.f32 %v79_v33, %v42_v27 }
  0xa8   :  { %v84_v31 = vmul.f32 0.00390625, %v72_v29  ;;  %v60_v32 = vpop.xlane.xlu0 %59  ;;  %v109_v35 = vsel %vm95_vm0, %v91_v28, 0.0  ;;  %v54_v29 = vld [vmem:[%s576_s1 + $0x60] sm:$0xff] }
  0xa9   :  { %v80_v34 = vmul.f32 0.00390625, %v60_v32  ;;  %v96_v54 = vsel %vm95_vm0, %v87_v43, 0.0 }
  0xaa   :  { %v92_v36 = vmul.f32 %v84_v31, %v43_v30 }
  0xab   :  { %v88_v37 = vmul.f32 %v80_v34, %v43_v30  ;;  %v75_v38 = vpop.xlane.xlu1 %74  ;;  %v127_v30 = vshrl.u32 %v126_v24, 7 }
  0xac   :  { %v110_v39 = vsel %vm95_vm0, %v92_v36, 0.0  ;;  %v85_v41 = vmul.f32 0.00390625, %v75_v38  ;;  %v63_v42 = vpop.xlane.xlu0 %62  ;;  %v46_v38 = vld [vmem:[%s576_s1 + $0x20] sm:$0xff] }
  0xad   :  { %v111_v44 = vadd.f32 %v110_v39, %v109_v35  ;;  %v81_v45 = vmul.f32 0.00390625, %v63_v42  ;;  %v97_v47 = vsel %vm95_vm0, %v88_v37, 0.0  ;;  %v128_v35 = vsub.s32 0, %v127_v30  ;;  %v47_v37 = vld [vmem:[%s576_s1 + $0x28] sm:$0xff]  ;;  %v48_v42 = vld [vmem:[%s576_s1 + $0x30] sm:$0xff] }
  0xae   :  { %v93_v46 = vmul.f32 %v85_v41, %v44_v40  ;;  %v98_v58 = vadd.f32 %v97_v47, %v96_v54  ;;  %v49_v41 = vld [vmem:[%s576_s1 + $0x38] sm:$0xff] }
  0xaf   :  { %v89_v48 = vmul.f32 %v81_v45, %v44_v40  ;;  %v78_v50 = vpop.xlane.xlu1 %77 }
  0xb0   :  { %v112_v51 = vsel %vm95_vm0, %v93_v46, 0.0  ;;  %v86_v52 = vmul.f32 0.00390625, %v78_v50  ;;  %v66_v53 = vpop.xlane.xlu0 %65 }
  0xb1   :  { %v113_v55 = vadd.f32 %v112_v51, %v111_v44  ;;  %v99_v56 = vsel %vm95_vm0, %v89_v48, 0.0  ;;  %v82_v57 = vmul.f32 0.00390625, %v66_v53 }
  0xb2   :  { %v94_v59 = vmul.f32 %v86_v52, %v45_v49  ;;  %v100_v61 = vadd.f32 %v99_v56, %v98_v58 }
  0xb3   :  { %v90_v60 = vmul.f32 %v82_v57, %v45_v49 }
  0xb4   :  { %v114_v62 = vsel %vm95_vm0, %v94_v59, 0.0 }
  0xb5   :  { %v115_v63 = vadd.f32 %v114_v62, %v113_v55  ;;  %v101_v3 = vsel %vm95_vm0, %v90_v60, 0.0  ;;  %v409_v60 = vmov 0   ;;  %v50_v62 = vld [vmem:[%s576_s1 + $0x40] sm:$0xff] }
  0xb6   :  { %v102_v7 = vadd.f32 %v101_v3, %v100_v61  ;;  %325 = vset.pattern.permute.xlu1 %v409_v60  ;;  %324 = vset.pattern.permute.xlu0 %v409_v60  ;;  %v51_v61 = vld [vmem:[%s576_s1 + $0x48] sm:$0xff] }
  0xb7   :  { %v116_v10 = vrot.slane %v115_v63, 4 }
  0xb8   :  { %v103_v11 = vrot.slane %v102_v7, 4 }
  0xb9   :  { %v117_v16 = vadd.f32 %v116_v10, %v115_v63 }
  0xba   :  { %v104_v17 = vadd.f32 %v103_v11, %v102_v7  ;;  %v53_v11 = vld [vmem:[%s576_s1 + $0x58] sm:$0xff] }
  0xbb   :  { %v118_v22 = vrot.slane %v117_v16, 2 }
  0xbc   :  { %v105_v23 = vrot.slane %v104_v17, 2 }
  0xbd   :  { %v119_v25 = vadd.f32 %v118_v22, %v117_v16  ;;  %v52_v16 = vld [vmem:[%s576_s1 + $0x50] sm:$0xff]  ;;  %s410_s1 = smov [#allocation5]  }
  0xbe   :  { %v106_v26 = vadd.f32 %v105_v23, %v104_v17  ;;  %s299_s22 = sshll.u32 %s410_s1, 4  ;;  %s300_s22 = int_to_ptr.vmem [resolvable:$true] %s299_s22 }
  0xbf   :  { %v120_v27 = vrot.slane %v119_v25, 1  ;;  %s380_s0 = scalar_lea.vmem %s300_s22, 2048  ;;  %p385_p9 = scmp.lt.s32.totalorder %s300_s22, %s300_s22 }
  0xc0   :  { %v107_v28 = vrot.slane %v106_v26, 1  ;;  %p381_p8 = scmp.ne.s32.totalorder %s300_s22, %s380_s0  ;;  %p386_p10 = scmp.lt.s32.totalorder %s380_s0, %s380_s0 }
  0xc1   :  { %v121_v31 = vadd.f32 %v120_v27, %v119_v25 }
  0xc2   :  { %v108_v32 = vadd.f32 %v107_v28, %v106_v26  ;;  %p387_p11 = por %p386_p10, %p385_p9 }
  0xc3   :  { %v123_v33 = vadd.f32 %v121_v31, %v54_v29 }
  0xc4   :  { %v122_v34 = vadd.f32 %v108_v32, %v54_v29  ;;  %p388_p12 = pnand %p387_p11, %p381_p8 }
  0xc5   :  { %v125_v39 = vmax.f32 %v123_v33, 0.0 }
  0xc6   :  { %v124_v36 = vmax.f32 %v122_v34, 0.0 }
  0xc7   :  { %v133_v45 = vrot.slane %v125_v39, %v128_v35 }
  0xc8   :  { %v129_v40 = vrot.slane %v124_v36, %v128_v35 }
  0xc9   :  { %v139_v52 = vmul.f32 %v133_v45, %v47_v37  ;;  %v138_v53 = vmul.f32 %v133_v45, %v46_v38  ;;  %v141_v56 = vmul.f32 %v133_v45, %v49_v41  ;;  %v140_v57 = vmul.f32 %v133_v45, %v48_v42 }
  0xca   :  { %v135_v43 = vmul.f32 %v129_v40, %v47_v37  ;;  %v134_v44 = vmul.f32 %v129_v40, %v46_v38  ;;  %v137_v48 = vmul.f32 %v129_v40, %v49_v41  ;;  %v136_v49 = vmul.f32 %v129_v40, %v48_v42 }
  0xcb   :  { %v157_v54 = vsel %vm95_vm0, %v139_v52, 0.0  ;;  %v154_v55 = vsel %vm95_vm0, %v138_v53, 0.0  ;;  %v163_v58 = vsel %vm95_vm0, %v141_v56, 0.0  ;;  %v160_v59 = vsel %vm95_vm0, %v140_v57, 0.0 }
  0xcc   :  { %v145_v46 = vsel %vm95_vm0, %v135_v43, 0.0  ;;  %v142_v47 = vsel %vm95_vm0, %v134_v44, 0.0  ;;  %v151_v50 = vsel %vm95_vm0, %v137_v48, 0.0  ;;  %v148_v51 = vsel %vm95_vm0, %v136_v49, 0.0 }
  0xcd   :  { %146 = vadd.xlane.f32.xlu1 %v145_v46  ;;  %143 = vadd.xlane.f32.xlu0 %v142_v47 }
  0xd1   :  { %152 = vadd.xlane.f32.xlu1 %v151_v50  ;;  %149 = vadd.xlane.f32.xlu0 %v148_v51 }
  0xd5   :  { %158 = vadd.xlane.f32.xlu1 %v157_v54  ;;  %155 = vadd.xlane.f32.xlu0 %v154_v55 }
  0xd9   :  { %164 = vadd.xlane.f32.xlu1 %v163_v58  ;;  %161 = vadd.xlane.f32.xlu0 %v160_v59 }
 0x15a   :  { %v147_v63 = vpop.xlane.xlu1 %146  ;;  %v144_v3 = vpop.xlane.xlu0 %143 }
 0x15b   :  { %v167_v7 = vadd.f32 %v147_v63, %v51_v61  ;;  %v166_v10 = vadd.f32 %v144_v3, %v50_v62 }
 0x15d   :  { %v312_v17 = vmul.f32 -1.442695, %v167_v7  ;;  %v311_v22 = vmul.f32 -1.442695, %v166_v10 }
 0x15e   :  { %v153_v23 = vpop.xlane.xlu1 %152  ;;  %v150_v24 = vpop.xlane.xlu0 %149 }
 0x15f   :  { %326 = vpow2.f32 %v312_v17  ;;  %v169_v25 = vadd.f32 %v153_v23, %v53_v11  ;;  %v168_v26 = vadd.f32 %v150_v24, %v52_v16 }
 0x160   :  { %328 = vpow2.f32 %v311_v22 }
 0x161   :  { %v314_v27 = vmul.f32 -1.442695, %v169_v25  ;;  %v313_v28 = vmul.f32 -1.442695, %v168_v26 }
 0x162   :  { %v159_v29 = vpop.xlane.xlu1 %158  ;;  %v156_v30 = vpop.xlane.xlu0 %155 }
 0x163   :  { %330 = vpow2.f32 %v314_v27  ;;  %v171_v31 = vadd.f32 %v159_v29, %v51_v61  ;;  %v170_v32 = vadd.f32 %v156_v30, %v50_v62 }
 0x164   :  { %332 = vpow2.f32 %v313_v28 }
 0x165   :  { %v315_v33 = vmul.f32 -1.442695, %v170_v32  ;;  %v316_v35 = vmul.f32 -1.442695, %v171_v31 }
 0x166   :  { %v162_v34 = vpop.xlane.xlu0 %161  ;;  %v165_v38 = vpop.xlane.xlu1 %164 }
 0x167   :  { %334 = vpow2.f32 %v315_v33  ;;  %v172_v36 = vadd.f32 %v162_v34, %v52_v16  ;;  %v173_v42 = vadd.f32 %v165_v38, %v53_v11 }
 0x168   :  { %336 = vpow2.f32 %v316_v35 }
 0x169   :  { %v327_v37 = vpop.eup %326  ;;  %v317_v43 = vmul.f32 -1.442695, %v172_v36  ;;  %v318_v47 = vmul.f32 -1.442695, %v173_v42 }
 0x16a   :  { %v329_v39 = vpop.eup %328  ;;  %v199_v40 = vadd.f32 1.0, %v327_v37 }
 0x16b   :  { %v198_v41 = vadd.f32 1.0, %v329_v39 }
 0x16c   :  { %338 = vrcp.f32 %v199_v40 }
 0x16d   :  { %v331_v44 = vpop.eup %330  ;;  %340 = vrcp.f32 %v198_v41 }
 0x16e   :  { %v333_v45 = vpop.eup %332  ;;  %342 = vpow2.f32 %v317_v43  ;;  %v201_v48 = vadd.f32 1.0, %v331_v44 }
 0x16f   :  { %v200_v46 = vadd.f32 1.0, %v333_v45 }
 0x171   :  { %344 = vrcp.f32 %v200_v46  ;;  %v335_v49 = vpop.eup %334 }
 0x172   :  { %346 = vpow2.f32 %v318_v47  ;;  %v337_v50 = vpop.eup %336  ;;  %v202_v51 = vadd.f32 1.0, %v335_v49 }
 0x173   :  { %348 = vrcp.f32 %v201_v48  ;;  %v203_v54 = vadd.f32 1.0, %v337_v50 }
 0x174   :  { %350 = vrcp.f32 %v202_v51 }
 0x175   :  { %352 = vrcp.f32 %v203_v54 }
 0x176   :  { %v339_v52 = vpop.eup %338 }
 0x177   :  { %v341_v53 = vpop.eup %340  ;;  %229 = vperm.xlu1 %325, %v339_v52  }
 0x178   :  { %224 = vperm.xlu0 %324, %v341_v53   ;;  %v343_v55 = vpop.eup %342 }
 0x179   :  { %v204_v57 = vadd.f32 1.0, %v343_v55 }
 0x17b   :  { %v345_v56 = vpop.eup %344  ;;  %354 = vrcp.f32 %v204_v57 }
 0x17c   :  { %234 = vperm.xlu1 %325, %v345_v56   ;;  %v347_v58 = vpop.eup %346 }
 0x17d   :  { %v349_v59 = vpop.eup %348  ;;  %v205_v60 = vadd.f32 1.0, %v347_v58 }
 0x17e   :  { %v351_v61 = vpop.eup %350 }
 0x17f   :  { %356 = vrcp.f32 %v205_v60  ;;  %v353_v62 = vpop.eup %352 }
 0x180   :  { %239 = vperm.xlu1 %325, %v349_v59  }
 0x184   :  { %244 = vperm.xlu1 %325, %v351_v61  }
 0x185   :  { %v355_v63 = vpop.eup %354 }
 0x188   :  { %249 = vperm.xlu1 %325, %v353_v62  }
 0x189   :  { %v357_v3 = vpop.eup %356 }
 0x18c   :  { %254 = vperm.xlu1 %325, %v355_v63  }
 0x190   :  { %259 = vperm.xlu1 %325, %v357_v3  }
 0x1f6   :  { %v230_v7 = vpop.permute.xlu1 %229 }
 0x1f7   :  { %v264_v10 = vmul.f32 %v230_v7, %v457_v8  ;;  %v265_v11 = vmul.f32 %v230_v7, %v459_v9  ;;  %v225_v16 = vpop.permute.xlu0 %224 }
 0x1f8   :  { %v262_v17 = vmul.f32 %v225_v16, %v445_v2  ;;  %v263_v22 = vmul.f32 %v225_v16, %v449_v4 }
 0x1f9   :  { %280 = vst [vmem:[#allocation5 + $0x10] sm:$0xff] %v264_v10  ;;  %281 = vst [vmem:[#allocation5 + $0x18] sm:$0xff] %v265_v11 }
 0x1fa   :  { %278 = vst [vmem:[#allocation5] sm:$0xff] %v262_v17  ;;  %279 = vst [vmem:[#allocation5 + $0x8] sm:$0xff] %v263_v22 }
 0x1fb   :  { %v235_v23 = vpop.permute.xlu1 %234 }
 0x1fc   :  { %v266_v24 = vmul.f32 %v235_v23, %v469_v14  ;;  %v267_v25 = vmul.f32 %v235_v23, %v471_v15 }
 0x1fe   :  { %282 = vst [vmem:[#allocation5 + $0x20] sm:$0xff] %v266_v24  ;;  %283 = vst [vmem:[#allocation5 + $0x28] sm:$0xff] %v267_v25 }
 0x1ff   :  { %v240_v26 = vpop.permute.xlu1 %239 }
 0x200   :  { %v268_v8 = vmul.f32 %v240_v26, %v481_v20  ;;  %v269_v9 = vmul.f32 %v240_v26, %v483_v21 }
 0x202   :  { %284 = vst [vmem:[#allocation5 + $0x30] sm:$0xff] %v268_v8  ;;  %285 = vst [vmem:[#allocation5 + $0x38] sm:$0xff] %v269_v9 }
 0x203   :  { %v245_v2 = vpop.permute.xlu1 %244 }
 0x204   :  { %v270_v4 = vmul.f32 %v245_v2, %v441_v0  ;;  %v271_v27 = vmul.f32 %v245_v2, %v443_v1 }
 0x206   :  { %286 = vst [vmem:[#allocation5 + $0x40] sm:$0xff] %v270_v4  ;;  %287 = vst [vmem:[#allocation5 + $0x48] sm:$0xff] %v271_v27 }
 0x207   :  { %v250_v28 = vpop.permute.xlu1 %249 }
 0x208   :  { %v272_v14 = vmul.f32 %v250_v28, %v451_v5  ;;  %v273_v15 = vmul.f32 %v250_v28, %v453_v6 }
 0x20a   :  { %288 = vst [vmem:[#allocation5 + $0x50] sm:$0xff] %v272_v14  ;;  %289 = vst [vmem:[#allocation5 + $0x58] sm:$0xff] %v273_v15 }
 0x20b   :  { %v255_v29 = vpop.permute.xlu1 %254 }
 0x20c   :  { %v274_v20 = vmul.f32 %v255_v29, %v465_v12  ;;  %v275_v21 = vmul.f32 %v255_v29, %v467_v13 }
 0x20e   :  { %290 = vst [vmem:[#allocation5 + $0x60] sm:$0xff] %v274_v20  ;;  %291 = vst [vmem:[#allocation5 + $0x68] sm:$0xff] %v275_v21 }
 0x20f   :  { %v260_v0 = vpop.permute.xlu1 %259 }
 0x210   :  { %v276_v1 = vmul.f32 %v260_v0, %v477_v18  ;;  %v277_v30 = vmul.f32 %v260_v0, %v479_v19 }
 0x212   :  { %292 = vst [vmem:[#allocation5 + $0x70] sm:$0xff] %v276_v1  ;;  %293 = vst [vmem:[#allocation5 + $0x78] sm:$0xff] %v277_v30 }
 0x213   :  { %391 = shalt.err (!%p388_p12)
}
 0x214   :  { %s392_s25 = scalar_lea.hbm %s577_s2, 2048 }
 0x215   :  { %p393_p13 = scmp.ne.s32.totalorder %s577_s2, %s392_s25  ;;  %p396_p0 = scmp.lt.u32.totalorder %s392_s25, %s577_s2 }
 0x217   :  { %p398_p1 = pnand %p396_p0, %p393_p13 }
 0x219   :  { %401 = shalt.err (!%p398_p1)
}
 0x21a   :  { %305 = dma.vmem_to_hbm [thread:$0]  %s300_s22, 2048, %s577_s2, [#allocation4], %s407_s19, %s407_s19, %s408_s20  }
 0x21b   :  { %404 = dma.done.wait [#allocation4], 2048  }
 0x21c   :  { %405 = vsyncadd [#allocation4], 4294965248 }
 0x21d   :  { %309 = vsyncpa [#allocation3], 1 }
 0x21e   :  { %310 = vsyncpa [#allocation4], 1 }

// kernel: tpu_custom_call.1
= control target key start
LH: loop header
LB: loop body
LE: loop exit
PB: predicated region body
PF: predicated region fallthrough
CT: control target
= control target key end

     0   :  { %7 = vsyncpa [#allocation3], 0  ;;  %s575_s0 = inlined_call_operand.hbm [shape: f32[2,32,256], index: 0, kind: input, shape index: {}, may-alias: {0,2}]   ;;  %s576_s1 = inlined_call_operand.vmem [shape: f32[4,32,2], index: 1, kind: input, shape index: {}]   ;;  %s577_s2 = inlined_call_operand.hbm [shape: f32[2,32,256], index: 2, kind: output, shape index: {}, may-alias: {0,2}]  }
   0x1   :  { %8 = vsyncpa [#allocation4], 0  ;;  %s406_s9 = smov [#allocation2]   ;;  %s358_s13 = scalar_lea.hbm %s575_s0, 2048 }
   0x2   :  { %s14_s10 = sshll.u32 %s406_s9, 4  ;;  %p359_p0 = scmp.ne.s32.totalorder %s575_s0, %s358_s13  ;;  %s15_s10 = int_to_ptr.vmem [resolvable:$true] %s14_s10 }
   0x3   :  { %p362_p1 = scmp.lt.u32.totalorder %s358_s13, %s575_s0 }
   0x5   :  { %p364_p2 = pnand %p362_p1, %p359_p0 }
   0x7   :  { %367 = shalt.err (!%p364_p2)
}
   0x8   :  { %s368_s18 = scalar_lea.vmem %s15_s10, 2048  ;;  %p373_p4 = scmp.lt.s32.totalorder %s15_s10, %s15_s10 }
   0x9   :  { %p369_p3 = scmp.ne.s32.totalorder %s15_s10, %s368_s18  ;;  %p374_p5 = scmp.lt.s32.totalorder %s368_s18, %s368_s18 }
   0xb   :  { %p375_p6 = por %p374_p5, %p373_p4 }
   0xd   :  { %p376_p7 = pnand %p375_p6, %p369_p3 }
   0xf   :  { %379 = shalt.err (!%p376_p7)
}
  0x10   :  { %s407_s19 = smov 256   ;;  %s408_s20 = smov 16  }
  0x11   :  { %20 = dma.hbm_to_vmem [thread:$0]  %s575_s0, 2048, %s15_s10, [#allocation3], %s407_s19, %s407_s19, %s408_s20  }
  0x12   :  { %402 = dma.done.wait [#allocation3], 2048  }
  0x13   :  { %403 = vsyncadd [#allocation3], 4294965248  ;;  %v441_v0 = vld [vmem:[#allocation2 + $0x40] sm:$0xff]  ;;  %v443_v1 = vld [vmem:[#allocation2 + $0x48] sm:$0xff]  ;;  %vm95_vm0 = vcmask 15360  }
  0x14   :  { %v445_v2 = vld [vmem:[#allocation2] sm:$0xff]  ;;  %v67_v3 = vadd.f32 %v443_v1, %v441_v0  ;;  %v449_v4 = vld [vmem:[#allocation2 + $0x8] sm:$0xff]  ;;  %v451_v5 = vld [vmem:[#allocation2 + $0x50] sm:$0xff] }
  0x15   :  { %v453_v6 = vld [vmem:[#allocation2 + $0x58] sm:$0xff]  ;;  %v55_v7 = vadd.f32 %v449_v4, %v445_v2  ;;  %v457_v8 = vld [vmem:[#allocation2 + $0x10] sm:$0xff]  ;;  %v465_v12 = vld [vmem:[#allocation2 + $0x60] sm:$0xff] }
  0x16   :  { %v459_v9 = vld [vmem:[#allocation2 + $0x18] sm:$0xff]  ;;  %68 = vadd.xlane.f32.xlu1 %v67_v3  ;;  %v70_v10 = vadd.f32 %v453_v6, %v451_v5  ;;  %v467_v13 = vld [vmem:[#allocation2 + $0x68] sm:$0xff]  ;;  %v469_v14 = vld [vmem:[#allocation2 + $0x20] sm:$0xff] }
  0x17   :  { %56 = vadd.xlane.f32.xlu0 %v55_v7  ;;  %v58_v11 = vadd.f32 %v459_v9, %v457_v8  ;;  %v471_v15 = vld [vmem:[#allocation2 + $0x28] sm:$0xff]  ;;  %v73_v16 = vadd.f32 %v467_v13, %v465_v12  ;;  %v477_v18 = vld [vmem:[#allocation2 + $0x70] sm:$0xff]  ;;  %v479_v19 = vld [vmem:[#allocation2 + $0x78] sm:$0xff] }
  0x18   :  { %v61_v17 = vadd.f32 %v471_v15, %v469_v14  ;;  %v481_v20 = vld [vmem:[#allocation2 + $0x30] sm:$0xff]  ;;  %v483_v21 = vld [vmem:[#allocation2 + $0x38] sm:$0xff]  ;;  %v76_v22 = vadd.f32 %v479_v19, %v477_v18  ;;  %v42_v27 = vld [vmem:[%s576_s1] sm:$0xff] }
  0x19   :  { %v64_v23 = vadd.f32 %v483_v21, %v481_v20  ;;  %v43_v30 = vld [vmem:[%s576_s1 + $0x8] sm:$0xff]  ;;  %v44_v40 = vld [vmem:[%s576_s1 + $0x10] sm:$0xff]  ;;  %v45_v49 = vld [vmem:[%s576_s1 + $0x18] sm:$0xff] }
  0x1a   :  { %71 = vadd.xlane.f32.xlu1 %v70_v10 }
  0x1b   :  { %59 = vadd.xlane.f32.xlu0 %v58_v11 }
  0x1e   :  { %74 = vadd.xlane.f32.xlu1 %v73_v16 }
  0x1f   :  { %62 = vadd.xlane.f32.xlu0 %v61_v17 }
  0x22   :  { %77 = vadd.xlane.f32.xlu1 %v76_v22 }
  0x23   :  { %65 = vadd.xlane.f32.xlu0 %v64_v23 }
  0xa3   :  { %v69_v24 = vpop.xlane.xlu1 %68 }
  0xa4   :  { %v83_v25 = vmul.f32 0.00390625, %v69_v24  ;;  %v57_v26 = vpop.xlane.xlu0 %56  ;;  %v126_v24 = vlaneseq }
  0xa5   :  { %v79_v33 = vmul.f32 0.00390625, %v57_v26 }
  0xa6   :  { %v91_v28 = vmul.f32 %v83_v25, %v42_v27 }
  0xa7   :  { %v72_v29 = vpop.xlane.xlu1 %71  ;;  %v87_v43 = vmul.f32 %v79_v33, %v42_v27 }
  0xa8   :  { %v84_v31 = vmul.f32 0.00390625, %v72_v29  ;;  %v60_v32 = vpop.xlane.xlu0 %59  ;;  %v109_v35 = vsel %vm95_vm0, %v91_v28, 0.0  ;;  %v54_v29 = vld [vmem:[%s576_s1 + $0x60] sm:$0xff] }
  0xa9   :  { %v80_v34 = vmul.f32 0.00390625, %v60_v32  ;;  %v96_v54 = vsel %vm95_vm0, %v87_v43, 0.0 }
  0xaa   :  { %v92_v36 = vmul.f32 %v84_v31, %v43_v30 }
  0xab   :  { %v88_v37 = vmul.f32 %v80_v34, %v43_v30  ;;  %v75_v38 = vpop.xlane.xlu1 %74  ;;  %v127_v30 = vshrl.u32 %v126_v24, 7 }
  0xac   :  { %v110_v39 = vsel %vm95_vm0, %v92_v36, 0.0  ;;  %v85_v41 = vmul.f32 0.00390625, %v75_v38  ;;  %v63_v42 = vpop.xlane.xlu0 %62  ;;  %v46_v38 = vld [vmem:[%s576_s1 + $0x20] sm:$0xff] }
  0xad   :  { %v111_v44 = vadd.f32 %v110_v39, %v109_v35  ;;  %v81_v45 = vmul.f32 0.00390625, %v63_v42  ;;  %v97_v47 = vsel %vm95_vm0, %v88_v37, 0.0  ;;  %v128_v35 = vsub.s32 0, %v127_v30  ;;  %v47_v37 = vld [vmem:[%s576_s1 + $0x28] sm:$0xff]  ;;  %v48_v42 = vld [vmem:[%s576_s1 + $0x30] sm:$0xff] }
  0xae   :  { %v93_v46 = vmul.f32 %v85_v41, %v44_v40  ;;  %v98_v58 = vadd.f32 %v97_v47, %v96_v54  ;;  %v49_v41 = vld [vmem:[%s576_s1 + $0x38] sm:$0xff] }
  0xaf   :  { %v89_v48 = vmul.f32 %v81_v45, %v44_v40  ;;  %v78_v50 = vpop.xlane.xlu1 %77 }
  0xb0   :  { %v112_v51 = vsel %vm95_vm0, %v93_v46, 0.0  ;;  %v86_v52 = vmul.f32 0.00390625, %v78_v50  ;;  %v66_v53 = vpop.xlane.xlu0 %65 }
  0xb1   :  { %v113_v55 = vadd.f32 %v112_v51, %v111_v44  ;;  %v99_v56 = vsel %vm95_vm0, %v89_v48, 0.0  ;;  %v82_v57 = vmul.f32 0.00390625, %v66_v53 }
  0xb2   :  { %v94_v59 = vmul.f32 %v86_v52, %v45_v49  ;;  %v100_v61 = vadd.f32 %v99_v56, %v98_v58 }
  0xb3   :  { %v90_v60 = vmul.f32 %v82_v57, %v45_v49 }
  0xb4   :  { %v114_v62 = vsel %vm95_vm0, %v94_v59, 0.0 }
  0xb5   :  { %v115_v63 = vadd.f32 %v114_v62, %v113_v55  ;;  %v101_v3 = vsel %vm95_vm0, %v90_v60, 0.0  ;;  %v409_v60 = vmov 0   ;;  %v50_v62 = vld [vmem:[%s576_s1 + $0x40] sm:$0xff] }
  0xb6   :  { %v102_v7 = vadd.f32 %v101_v3, %v100_v61  ;;  %325 = vset.pattern.permute.xlu1 %v409_v60  ;;  %324 = vset.pattern.permute.xlu0 %v409_v60  ;;  %v51_v61 = vld [vmem:[%s576_s1 + $0x48] sm:$0xff] }
  0xb7   :  { %v116_v10 = vrot.slane %v115_v63, 4 }
  0xb8   :  { %v103_v11 = vrot.slane %v102_v7, 4 }
  0xb9   :  { %v117_v16 = vadd.f32 %v116_v10, %v115_v63 }
  0xba   :  { %v104_v17 = vadd.f32 %v103_v11, %v102_v7  ;;  %v53_v11 = vld [vmem:[%s576_s1 + $0x58] sm:$0xff] }
  0xbb   :  { %v118_v22 = vrot.slane %v117_v16, 2 }
  0xbc   :  { %v105_v23 = vrot.slane %v104_v17, 2 }
  0xbd   :  { %v119_v25 = vadd.f32 %v118_v22, %v117_v16  ;;  %v52_v16 = vld [vmem:[%s576_s1 + $0x50] sm:$0xff]  ;;  %s410_s1 = smov [#allocation5]  }
  0xbe   :  { %v106_v26 = vadd.f32 %v105_v23, %v104_v17  ;;  %s299_s22 = sshll.u32 %s410_s1, 4  ;;  %s300_s22 = int_to_ptr.vmem [resolvable:$true] %s299_s22 }
  0xbf   :  { %v120_v27 = vrot.slane %v119_v25, 1  ;;  %s380_s0 = scalar_lea.vmem %s300_s22, 2048  ;;  %p385_p9 = scmp.lt.s32.totalorder %s300_s22, %s300_s22 }
  0xc0   :  { %v107_v28 = vrot.slane %v106_v26, 1  ;;  %p381_p8 = scmp.ne.s32.totalorder %s300_s22, %s380_s0  ;;  %p386_p10 = scmp.lt.s32.totalorder %s380_s0, %s380_s0 }
  0xc1   :  { %v121_v31 = vadd.f32 %v120_v27, %v119_v25 }
  0xc2   :  { %v108_v32 = vadd.f32 %v107_v28, %v106_v26  ;;  %p387_p11 = por %p386_p10, %p385_p9 }
  0xc3   :  { %v123_v33 = vadd.f32 %v121_v31, %v54_v29 }
  0xc4   :  { %v122_v34 = vadd.f32 %v108_v32, %v54_v29  ;;  %p388_p12 = pnand %p387_p11, %p381_p8 }
  0xc5   :  { %v125_v39 = vmax.f32 %v123_v33, 0.0 }
  0xc6   :  { %v124_v36 = vmax.f32 %v122_v34, 0.0 }
  0xc7   :  { %v133_v45 = vrot.slane %v125_v39, %v128_v35 }
  0xc8   :  { %v129_v40 = vrot.slane %v124_v36, %v128_v35 }
  0xc9   :  { %v139_v52 = vmul.f32 %v133_v45, %v47_v37  ;;  %v138_v53 = vmul.f32 %v133_v45, %v46_v38  ;;  %v141_v56 = vmul.f32 %v133_v45, %v49_v41  ;;  %v140_v57 = vmul.f32 %v133_v45, %v48_v42 }
  0xca   :  { %v135_v43 = vmul.f32 %v129_v40, %v47_v37  ;;  %v134_v44 = vmul.f32 %v129_v40, %v46_v38  ;;  %v137_v48 = vmul.f32 %v129_v40, %v49_v41  ;;  %v136_v49 = vmul.f32 %v129_v40, %v48_v42 }
  0xcb   :  { %v157_v54 = vsel %vm95_vm0, %v139_v52, 0.0  ;;  %v154_v55 = vsel %vm95_vm0, %v138_v53, 0.0  ;;  %v163_v58 = vsel %vm95_vm0, %v141_v56, 0.0  ;;  %v160_v59 = vsel %vm95_vm0, %v140_v57, 0.0 }
  0xcc   :  { %v145_v46 = vsel %vm95_vm0, %v135_v43, 0.0  ;;  %v142_v47 = vsel %vm95_vm0, %v134_v44, 0.0  ;;  %v151_v50 = vsel %vm95_vm0, %v137_v48, 0.0  ;;  %v148_v51 = vsel %vm95_vm0, %v136_v49, 0.0 }
  0xcd   :  { %146 = vadd.xlane.f32.xlu1 %v145_v46  ;;  %143 = vadd.xlane.f32.xlu0 %v142_v47 }
  0xd1   :  { %152 = vadd.xlane.f32.xlu1 %v151_v50  ;;  %149 = vadd.xlane.f32.xlu0 %v148_v51 }
  0xd5   :  { %158 = vadd.xlane.f32.xlu1 %v157_v54  ;;  %155 = vadd.xlane.f32.xlu0 %v154_v55 }
  0xd9   :  { %164 = vadd.xlane.f32.xlu1 %v163_v58  ;;  %161 = vadd.xlane.f32.xlu0 %v160_v59 }
 0x15a   :  { %v147_v63 = vpop.xlane.xlu1 %146  ;;  %v144_v3 = vpop.xlane.xlu0 %143 }
 0x15b   :  { %v167_v7 = vadd.f32 %v147_v63, %v51_v61  ;;  %v166_v10 = vadd.f32 %v144_v3, %v50_v62 }
 0x15d   :  { %v312_v17 = vmul.f32 -1.442695, %v167_v7  ;;  %v311_v22 = vmul.f32 -1.442695, %v166_v10 }
 0x15e   :  { %v153_v23 = vpop.xlane.xlu1 %152  ;;  %v150_v24 = vpop.xlane.xlu0 %149 }
 0x15f   :  { %326 = vpow2.f32 %v312_v17  ;;  %v169_v25 = vadd.f32 %v153_v23, %v53_v11  ;;  %v168_v26 = vadd.f32 %v150_v24, %v52_v16 }
 0x160   :  { %328 = vpow2.f32 %v311_v22 }
 0x161   :  { %v314_v27 = vmul.f32 -1.442695, %v169_v25  ;;  %v313_v28 = vmul.f32 -1.442695, %v168_v26 }
 0x162   :  { %v159_v29 = vpop.xlane.xlu1 %158  ;;  %v156_v30 = vpop.xlane.xlu0 %155 }
 0x163   :  { %330 = vpow2.f32 %v314_v27  ;;  %v171_v31 = vadd.f32 %v159_v29, %v51_v61  ;;  %v170_v32 = vadd.f32 %v156_v30, %v50_v62 }
 0x164   :  { %332 = vpow2.f32 %v313_v28 }
 0x165   :  { %v315_v33 = vmul.f32 -1.442695, %v170_v32  ;;  %v316_v35 = vmul.f32 -1.442695, %v171_v31 }
 0x166   :  { %v162_v34 = vpop.xlane.xlu0 %161  ;;  %v165_v38 = vpop.xlane.xlu1 %164 }
 0x167   :  { %334 = vpow2.f32 %v315_v33  ;;  %v172_v36 = vadd.f32 %v162_v34, %v52_v16  ;;  %v173_v42 = vadd.f32 %v165_v38, %v53_v11 }
 0x168   :  { %336 = vpow2.f32 %v316_v35 }
 0x169   :  { %v327_v37 = vpop.eup %326  ;;  %v317_v43 = vmul.f32 -1.442695, %v172_v36  ;;  %v318_v47 = vmul.f32 -1.442695, %v173_v42 }
 0x16a   :  { %v329_v39 = vpop.eup %328  ;;  %v199_v40 = vadd.f32 1.0, %v327_v37 }
 0x16b   :  { %v198_v41 = vadd.f32 1.0, %v329_v39 }
 0x16c   :  { %338 = vrcp.f32 %v199_v40 }
 0x16d   :  { %v331_v44 = vpop.eup %330  ;;  %340 = vrcp.f32 %v198_v41 }
 0x16e   :  { %v333_v45 = vpop.eup %332  ;;  %342 = vpow2.f32 %v317_v43  ;;  %v201_v48 = vadd.f32 1.0, %v331_v44 }
 0x16f   :  { %v200_v46 = vadd.f32 1.0, %v333_v45 }
 0x171   :  { %344 = vrcp.f32 %v200_v46  ;;  %v335_v49 = vpop.eup %334 }
 0x172   :  { %346 = vpow2.f32 %v318_v47  ;;  %v337_v50 = vpop.eup %336  ;;  %v202_v51 = vadd.f32 1.0, %v335_v49 }
 0x173   :  { %348 = vrcp.f32 %v201_v48  ;;  %v203_v54 = vadd.f32 1.0, %v337_v50 }
 0x174   :  { %350 = vrcp.f32 %v202_v51 }
 0x175   :  { %352 = vrcp.f32 %v203_v54 }
 0x176   :  { %v339_v52 = vpop.eup %338 }
 0x177   :  { %v341_v53 = vpop.eup %340  ;;  %229 = vperm.xlu1 %325, %v339_v52  }
 0x178   :  { %224 = vperm.xlu0 %324, %v341_v53   ;;  %v343_v55 = vpop.eup %342 }
 0x179   :  { %v204_v57 = vadd.f32 1.0, %v343_v55 }
 0x17b   :  { %v345_v56 = vpop.eup %344  ;;  %354 = vrcp.f32 %v204_v57 }
 0x17c   :  { %234 = vperm.xlu1 %325, %v345_v56   ;;  %v347_v58 = vpop.eup %346 }
 0x17d   :  { %v349_v59 = vpop.eup %348  ;;  %v205_v60 = vadd.f32 1.0, %v347_v58 }
 0x17e   :  { %v351_v61 = vpop.eup %350 }
 0x17f   :  { %356 = vrcp.f32 %v205_v60  ;;  %v353_v62 = vpop.eup %352 }
 0x180   :  { %239 = vperm.xlu1 %325, %v349_v59  }
 0x184   :  { %244 = vperm.xlu1 %325, %v351_v61  }
 0x185   :  { %v355_v63 = vpop.eup %354 }
 0x188   :  { %249 = vperm.xlu1 %325, %v353_v62  }
 0x189   :  { %v357_v3 = vpop.eup %356 }
 0x18c   :  { %254 = vperm.xlu1 %325, %v355_v63  }
 0x190   :  { %259 = vperm.xlu1 %325, %v357_v3  }
 0x1f6   :  { %v230_v7 = vpop.permute.xlu1 %229 }
 0x1f7   :  { %v264_v10 = vmul.f32 %v230_v7, %v457_v8  ;;  %v265_v11 = vmul.f32 %v230_v7, %v459_v9  ;;  %v225_v16 = vpop.permute.xlu0 %224 }
 0x1f8   :  { %v262_v17 = vmul.f32 %v225_v16, %v445_v2  ;;  %v263_v22 = vmul.f32 %v225_v16, %v449_v4 }
 0x1f9   :  { %280 = vst [vmem:[#allocation5 + $0x10] sm:$0xff] %v264_v10  ;;  %281 = vst [vmem:[#allocation5 + $0x18] sm:$0xff] %v265_v11 }
 0x1fa   :  { %278 = vst [vmem:[#allocation5] sm:$0xff] %v262_v17  ;;  %279 = vst [vmem:[#allocation5 + $0x8] sm:$0xff] %v263_v22 }
 0x1fb   :  { %v235_v23 = vpop.permute.xlu1 %234 }
 0x1fc   :  { %v266_v24 = vmul.f32 %v235_v23, %v469_v14  ;;  %v267_v25 = vmul.f32 %v235_v23, %v471_v15 }
 0x1fe   :  { %282 = vst [vmem:[#allocation5 + $0x20] sm:$0xff] %v266_v24  ;;  %283 = vst [vmem:[#allocation5 + $0x28] sm:$0xff] %v267_v25 }
 0x1ff   :  { %v240_v26 = vpop.permute.xlu1 %239 }
 0x200   :  { %v268_v8 = vmul.f32 %v240_v26, %v481_v20  ;;  %v269_v9 = vmul.f32 %v240_v26, %v483_v21 }
 0x202   :  { %284 = vst [vmem:[#allocation5 + $0x30] sm:$0xff] %v268_v8  ;;  %285 = vst [vmem:[#allocation5 + $0x38] sm:$0xff] %v269_v9 }
 0x203   :  { %v245_v2 = vpop.permute.xlu1 %244 }
 0x204   :  { %v270_v4 = vmul.f32 %v245_v2, %v441_v0  ;;  %v271_v27 = vmul.f32 %v245_v2, %v443_v1 }
 0x206   :  { %286 = vst [vmem:[#allocation5 + $0x40] sm:$0xff] %v270_v4  ;;  %287 = vst [vmem:[#allocation5 + $0x48] sm:$0xff] %v271_v27 }
 0x207   :  { %v250_v28 = vpop.permute.xlu1 %249 }
 0x208   :  { %v272_v14 = vmul.f32 %v250_v28, %v451_v5  ;;  %v273_v15 = vmul.f32 %v250_v28, %v453_v6 }
 0x20a   :  { %288 = vst [vmem:[#allocation5 + $0x50] sm:$0xff] %v272_v14  ;;  %289 = vst [vmem:[#allocation5 + $0x58] sm:$0xff] %v273_v15 }
 0x20b   :  { %v255_v29 = vpop.permute.xlu1 %254 }
 0x20c   :  { %v274_v20 = vmul.f32 %v255_v29, %v465_v12  ;;  %v275_v21 = vmul.f32 %v255_v29, %v467_v13 }
 0x20e   :  { %290 = vst [vmem:[#allocation5 + $0x60] sm:$0xff] %v274_v20  ;;  %291 = vst [vmem:[#allocation5 + $0x68] sm:$0xff] %v275_v21 }
 0x20f   :  { %v260_v0 = vpop.permute.xlu1 %259 }
 0x210   :  { %v276_v1 = vmul.f32 %v260_v0, %v477_v18  ;;  %v277_v30 = vmul.f32 %v260_v0, %v479_v19 }
 0x212   :  { %292 = vst [vmem:[#allocation5 + $0x70] sm:$0xff] %v276_v1  ;;  %293 = vst [vmem:[#allocation5 + $0x78] sm:$0xff] %v277_v30 }
 0x213   :  { %391 = shalt.err (!%p388_p12)
}
 0x214   :  { %s392_s25 = scalar_lea.hbm %s577_s2, 2048 }
 0x215   :  { %p393_p13 = scmp.ne.s32.totalorder %s577_s2, %s392_s25  ;;  %p396_p0 = scmp.lt.u32.totalorder %s392_s25, %s577_s2 }
 0x217   :  { %p398_p1 = pnand %p396_p0, %p393_p13 }
 0x219   :  { %401 = shalt.err (!%p398_p1)
}
 0x21a   :  { %305 = dma.vmem_to_hbm [thread:$0]  %s300_s22, 2048, %s577_s2, [#allocation4], %s407_s19, %s407_s19, %s408_s20  }
 0x21b   :  { %404 = dma.done.wait [#allocation4], 2048  }
 0x21c   :  { %405 = vsyncadd [#allocation4], 4294965248 }
 0x21d   :  { %309 = vsyncpa [#allocation3], 1 }
 0x21e   :  { %310 = vsyncpa [#allocation4], 1 }

</bundles_post_ra>
